<compile_context>
chip_gen: v5e
topology: v5e:2x2
jax: 0.10.0
libtpu: 0.0.40
codegen_flags: <defaults>
</compile_context>

<pallas_src>
import functools

import jax
import jax.numpy as jnp
from jax.experimental import pallas as pl
from jax.experimental.pallas import tpu as pltpu


def _distil_loss_kernel(student_ref, teacher_ref, target_ref, out_ref, acc_ref,
                        *, alpha: float, temp: float, batch_size: int,
                        tiles_per_split: int, need_mask: bool):
    c = pl.program_id(0)            # batch split (one per TensorCore on v7x)
    i = pl.program_id(1)            # tile within the split (sequential)
    n_inner = pl.num_programs(1)

    @pl.when(i == 0)
    def _init():
        acc_ref[...] = jnp.zeros_like(acc_ref)

    s = student_ref[...].astype(jnp.float32)     # (TB, C)
    t = teacher_ref[...].astype(jnp.float32)     # (TB, C)
    tgt = target_ref[...]                        # (TB, 1) int32
    TB, C = s.shape

    if need_mask:
        # Ragged / padded tile: rows past the true batch contribute nothing.
        tile_idx = c * tiles_per_split + i
        row_ids = tile_idx * TB + jax.lax.broadcasted_iota(jnp.int32, (TB, 1), 0)
        valid = row_ids < batch_size                     # (TB, 1) bool
        s = jnp.where(valid, s, 0.0)                     # scrubs OOB garbage
        t = jnp.where(valid, t, 0.0)

    inv_temp = 1.0 / temp

    # ---- student / T log-softmax stats -----------------------------------
    s_t = s * inv_temp
    s_max = jnp.max(s_t, axis=1, keepdims=True)                     # (TB, 1)
    s_z = s_t - s_max
    s_lse = jnp.log(jnp.sum(jnp.exp(s_z), axis=1, keepdims=True))   # (TB, 1)

    # ---- teacher / T softmax stats (q never materialized) ----------------
    t_t = t * inv_temp
    t_max = jnp.max(t_t, axis=1, keepdims=True)
    t_z = t_t - t_max
    t_exp = jnp.exp(t_z)
    t_sum = jnp.sum(t_exp, axis=1, keepdims=True)                   # (TB, 1)
    inv_t_sum = pl.reciprocal(t_sum, approx=False)

    # per-row KL = sum_c q*(log q - log p)
    #            = sum_c t_exp*(t_z - s_z)/t_sum - log(t_sum) + s_lse
    kl_row = (jnp.sum(t_exp * (t_z - s_z), axis=1, keepdims=True) * inv_t_sum
              - jnp.log(t_sum) + s_lse)                             # (TB, 1)

    # ---- cross-entropy on raw student logits ------------------------------
    # CE_row = r_max + r_lse - s[tgt] with r_max = T*s_max (max is scale-
    # equivariant), which simplifies to  r_lse - T * s_z[tgt].
    class_ids = jax.lax.broadcasted_iota(jnp.int32, (TB, C), 1)
    s_z_picked = jnp.sum(jnp.where(class_ids == tgt, s_z, 0.0),
                         axis=1, keepdims=True)                     # (TB, 1)
    if temp == 1.0:
        r_lse = s_lse                      # reuse: no extra exp/sum pass
    else:
        r_lse = jnp.log(jnp.sum(jnp.exp(temp * s_z), axis=1, keepdims=True))
    ce_row = r_lse - temp * s_z_picked                              # (TB, 1)

    contrib = (alpha * temp * temp) * kl_row + (1.0 - alpha) * ce_row
    if need_mask:
        contrib = jnp.where(valid, contrib, 0.0)
    acc_ref[...] += contrib               # vector accumulate; no per-step reduce

    @pl.when(i == n_inner - 1)
    def _finalize():
        # Single cross-sublane reduction + scalar store per split.
        out_ref[0, 0] = jnp.sum(acc_ref[...]) * (1.0 / float(batch_size))


def _per_row_vmem_bytes(C: int, in_itemsize: int) -> int:
    io_per_row = 2 * 2 * C * in_itemsize   # student+teacher tiles, 2 pipeline bufs
    tmp_per_row = 4 * C * 4                # ~4 live (TB, C) f32 intermediates
    tgt_per_row = 2 * 512                  # (TB,1) i32 tile lane-padded, 2 bufs
    acc_per_row = 512                      # (TB,1) f32 accumulator, lane-padded
    return io_per_row + tmp_per_row + tgt_per_row + acc_per_row


def _pick_tile_rows(B: int, C: int, in_itemsize: int,
                    vmem_budget_bytes: int) -> int:
    """Biggest batch tile that (a) moves >= ~4 MiB of logits per grid step so
    the ~0.35us/step overhead is negligible and (b) fits the VMEM budget
    including in-kernel f32 temporaries."""
    per_row = _per_row_vmem_bytes(C, in_itemsize)
    max_rows = max(8, (vmem_budget_bytes // per_row) // 8 * 8)

    target_rows = pl.cdiv(4 * 1024 * 1024, 2 * C * in_itemsize)
    target_rows = max(256, ((target_rows + 7) // 8) * 8)

    tb = min(max_rows, target_rows)
    if B <= tb:
        return B                           # single full-extent block
    return tb                              # multiple of 8


def distil_loss(student_logits, teacher_logits, target,
                alpha: float = 0.5, temp: float = 1.0,
                block_rows: int | None = None):
    """Pallas TPU implementation of DistilLoss.forward.

    student_logits, teacher_logits: (B, C) float arrays (f32 or bf16).
    target: (B,) int class labels.  Returns a scalar float32.
    """
    B, C = student_logits.shape
    assert teacher_logits.shape == (B, C)
    target_2d = target.astype(jnp.int32).reshape(B, 1)

    in_itemsize = max(jnp.dtype(student_logits.dtype).itemsize,
                      jnp.dtype(teacher_logits.dtype).itemsize)

    try:
        vmem_cap = int(pltpu.get_tpu_info().vmem_capacity_bytes)
    except Exception:
        vmem_cap = 64 * 1024 * 1024        # conservative (v7x per-core physical)

    if block_rows is not None:
        TB = min(block_rows, B)
    else:
        TB = _pick_tile_rows(B, C, in_itemsize, vmem_budget_bytes=vmem_cap // 2)

    total_tiles = pl.cdiv(B, TB)
    num_splits = 2 if total_tiles >= 2 else 1       # v7x: one split per TC
    tiles_per_split = pl.cdiv(total_tiles, num_splits)
    need_mask = (num_splits * tiles_per_split * TB != B)

    if num_splits * tiles_per_split == total_tiles:
        def tile_index(c, i):
            return c * tiles_per_split + i
    else:
        last_tile = total_tiles - 1                 # clamp the one padded step
        def tile_index(c, i):
            return jnp.minimum(c * tiles_per_split + i, last_tile)

    def logit_map(c, i):
        return (tile_index(c, i), 0)

    # Explicit scoped-VMEM limit from the real tile footprint (+ headroom).
    footprint = TB * _per_row_vmem_bytes(C, in_itemsize) + (1 << 20)
    vmem_limit = int(min(max(footprint * 5 // 4, 16 * 1024 * 1024),
                         vmem_cap * 9 // 10))

    kernel = functools.partial(
        _distil_loss_kernel, alpha=float(alpha), temp=float(temp),
        batch_size=B, tiles_per_split=tiles_per_split, need_mask=need_mask)

    partials = pl.pallas_call(
        kernel,
        out_shape=jax.ShapeDtypeStruct((num_splits, 1), jnp.float32),
        grid=(num_splits, tiles_per_split),
        in_specs=[
            pl.BlockSpec((TB, C), logit_map),        # student tile
            pl.BlockSpec((TB, C), logit_map),        # teacher tile
            pl.BlockSpec((TB, 1), logit_map),        # target indices tile
        ],
        out_specs=pl.BlockSpec((1, 1), lambda c, i: (c, 0),
                               memory_space=pltpu.MemorySpace.SMEM),
        scratch_shapes=[pltpu.VMEM((TB, 1), jnp.float32)],
        compiler_params=pltpu.CompilerParams(
            dimension_semantics=("parallel", "arbitrary"),
            vmem_limit_bytes=vmem_limit),
    )(student_logits, teacher_logits, target_2d)

    return jnp.sum(partials)                         # combine per-core partials


def _distil_loss_ref(student_logits, teacher_logits, target,
                     alpha=0.5, temp=1.0):
    """Pure-JAX reference mirroring the PyTorch forward."""
    B = student_logits.shape[0]
    s = student_logits.astype(jnp.float32)
    t = teacher_logits.astype(jnp.float32)
    p = jax.nn.log_softmax(s / temp, axis=1)
    q = jax.nn.softmax(t / temp, axis=1)
    l_kl = jnp.sum(q * (jnp.log(q) - p)) * temp ** 2 / B
    log_p_raw = jax.nn.log_softmax(s, axis=1)
    l_ce = -jnp.mean(jnp.take_along_axis(log_p_raw, target[:, None], axis=1))
    return l_kl * alpha + l_ce * (1.0 - alpha)


if __name__ == "__main__":
    key = jax.random.PRNGKey(0)
    k1, k2, k3, k4, k5, k6, k7, k8, k9 = jax.random.split(key, 9)

    # --- check 1: small single-tile case, temp != 1 -----------------------
    B, C = 8, 32
    student = jax.random.normal(k1, (B, C), dtype=jnp.float32)
    teacher = jax.random.normal(k2, (B, C), dtype=jnp.float32)
    target = jax.random.randint(k3, (B,), 0, C, dtype=jnp.int32)

    loss = distil_loss(student, teacher, target, alpha=0.5, temp=2.0)
    jax.block_until_ready(loss)
    ref = _distil_loss_ref(student, teacher, target, alpha=0.5, temp=2.0)
    assert jnp.allclose(loss, ref, rtol=1e-5, atol=1e-5), (loss, ref)

    # --- check 2: odd tile count -> 2-way split with padded+ragged tiles ---
    B2, C2 = 20, 32
    student2 = jax.random.normal(k4, (B2, C2), dtype=jnp.float32)
    teacher2 = jax.random.normal(k5, (B2, C2), dtype=jnp.float32)
    target2 = jax.random.randint(k6, (B2,), 0, C2, dtype=jnp.int32)

    loss2 = distil_loss(student2, teacher2, target2,
                        alpha=0.3, temp=1.0, block_rows=8)  # 3 tiles, 2 splits
    jax.block_until_ready(loss2)
    ref2 = _distil_loss_ref(student2, teacher2, target2, alpha=0.3, temp=1.0)
    assert jnp.allclose(loss2, ref2, rtol=1e-5, atol=1e-5), (loss2, ref2)

    # --- check 3: bf16 logits, even 2-way split, temp != 1 -----------------
    B3, C3 = 32, 128
    student3 = jax.random.normal(k7, (B3, C3), dtype=jnp.bfloat16)
    teacher3 = jax.random.normal(k8, (B3, C3), dtype=jnp.bfloat16)
    target3 = jax.random.randint(k9, (B3,), 0, C3, dtype=jnp.int32)

    loss3 = distil_loss(student3, teacher3, target3,
                        alpha=0.7, temp=4.0, block_rows=8)  # 4 tiles, 2 splits
    jax.block_until_ready(loss3)
    ref3 = _distil_loss_ref(student3, teacher3, target3, alpha=0.7, temp=4.0)
    assert jnp.allclose(loss3, ref3, rtol=1e-4, atol=1e-4), (loss3, ref3)

    print("KERNEL_OK")
</pallas_src>

<mosaic_0001>
module attributes {stable_mosaic.version = 11 : i64} {
  func.func @_distil_loss_kernel(%arg0: i32, %arg1: i32, %arg2: memref<8x32xf32, #tpu.memory_space<vmem>>, %arg3: memref<8x32xf32, #tpu.memory_space<vmem>>, %arg4: memref<8x1xi32, #tpu.memory_space<vmem>>, %arg5: memref<1x1xf32, #tpu.memory_space<smem>>, %arg6: memref<8x1xf32, #tpu.memory_space<vmem>>) attributes {dimension_semantics = [#tpu.dimension_semantics<parallel>, #tpu.dimension_semantics<arbitrary>], iteration_bounds = array<i64: 1, 1>, scalar_prefetch = 0 : i64, scratch_operands = 1 : i64, tpu.core_type = #tpu.core_type<tc>, window_params = [{transform_indices = @transform_0, window_bounds = array<i64: 8, 32>}, {transform_indices = @transform_1, window_bounds = array<i64: 8, 32>}, {transform_indices = @transform_2, window_bounds = array<i64: 8, 1>}, {transform_indices = @transform_3, window_bounds = array<i64: 1, 1>}]} {
    %c0_i32 = arith.constant 0 : i32
    %0 = arith.cmpi eq, %arg1, %c0_i32 : i32
    %1 = arith.extui %0 : i1 to i32
    %c0_i32_0 = arith.constant 0 : i32
    %2 = arith.cmpi ne, %1, %c0_i32_0 : i32
    scf.if %2 {
      %cst_25 = arith.constant 0.000000e+00 : f32
      %61 = vector.broadcast %cst_25 : f32 to vector<8x1xf32>
      %c0_26 = arith.constant 0 : index
      %c0_27 = arith.constant 0 : index
      %62 = vector.load %arg6[%c0_26, %c0_27] : memref<8x1xf32, #tpu.memory_space<vmem>>, vector<8x1xf32>
      tpu.vector_store %arg6[%c0_26, %c0_27], %61 {strides = array<i32>} : memref<8x1xf32, #tpu.memory_space<vmem>>, vector<8x1xf32>,
    } else {
    }
    %c0 = arith.constant 0 : index
    %c0_1 = arith.constant 0 : index
    %3 = vector.load %arg2[%c0, %c0_1] : memref<8x32xf32, #tpu.memory_space<vmem>>, vector<8x32xf32>
    %c0_2 = arith.constant 0 : index
    %c0_3 = arith.constant 0 : index
    %4 = vector.load %arg3[%c0_2, %c0_3] : memref<8x32xf32, #tpu.memory_space<vmem>>, vector<8x32xf32>
    %c0_4 = arith.constant 0 : index
    %c0_5 = arith.constant 0 : index
    %5 = vector.load %arg4[%c0_4, %c0_5] : memref<8x1xi32, #tpu.memory_space<vmem>>, vector<8x1xi32>
    %cst = arith.constant 5.000000e-01 : f32
    %6 = vector.broadcast %cst : f32 to vector<8x32xf32>
    %7 = arith.mulf %3, %6 : vector<8x32xf32>
    %cst_6 = arith.constant dense<0xFF800000> : vector<8xf32>
    %8 = vector.multi_reduction <maximumf>, %7, %cst_6 [1] : vector<8x32xf32> to vector<8xf32>
    %9 = vector.shape_cast %8 : vector<8xf32> to vector<8x1xf32>
    %10 = vector.broadcast %9 : vector<8x1xf32> to vector<8x32xf32>
    %11 = arith.subf %7, %10 : vector<8x32xf32>
    %12 = math.exp %11 : vector<8x32xf32>
    %cst_7 = arith.constant dense<0.000000e+00> : vector<8xf32>
    %13 = vector.multi_reduction <add>, %12, %cst_7 [1] : vector<8x32xf32> to vector<8xf32>
    %14 = vector.shape_cast %13 : vector<8xf32> to vector<8x1xf32>
    %15 = math.log %14 : vector<8x1xf32>
    %cst_8 = arith.constant 5.000000e-01 : f32
    %16 = vector.broadcast %cst_8 : f32 to vector<8x32xf32>
    %17 = arith.mulf %4, %16 : vector<8x32xf32>
    %cst_9 = arith.constant dense<0xFF800000> : vector<8xf32>
    %18 = vector.multi_reduction <maximumf>, %17, %cst_9 [1] : vector<8x32xf32> to vector<8xf32>
    %19 = vector.shape_cast %18 : vector<8xf32> to vector<8x1xf32>
    %20 = vector.broadcast %19 : vector<8x1xf32> to vector<8x32xf32>
    %21 = arith.subf %17, %20 : vector<8x32xf32>
    %22 = math.exp %21 : vector<8x32xf32>
    %cst_10 = arith.constant dense<0.000000e+00> : vector<8xf32>
    %23 = vector.multi_reduction <add>, %22, %cst_10 [1] : vector<8x32xf32> to vector<8xf32>
    %24 = vector.shape_cast %23 : vector<8xf32> to vector<8x1xf32>
    %25 = tpu.reciprocal %24 : vector<8x1xf32> -> vector<8x1xf32>
    %26 = arith.subf %21, %11 : vector<8x32xf32>
    %27 = arith.mulf %22, %26 : vector<8x32xf32>
    %cst_11 = arith.constant dense<0.000000e+00> : vector<8xf32>
    %28 = vector.multi_reduction <add>, %27, %cst_11 [1] : vector<8x32xf32> to vector<8xf32>
    %29 = vector.shape_cast %28 : vector<8xf32> to vector<8x1xf32>
    %30 = arith.mulf %29, %25 : vector<8x1xf32>
    %31 = math.log %24 : vector<8x1xf32>
    %32 = arith.subf %30, %31 : vector<8x1xf32>
    %33 = arith.addf %32, %15 : vector<8x1xf32>
    %34 = tpu.iota {dimensions = array<i32: 1>} : vector<8x32xi32>
    %35 = vector.broadcast %5 : vector<8x1xi32> to vector<8x32xi32>
    %36 = arith.cmpi eq, %34, %35 : vector<8x32xi32>
    %cst_12 = arith.constant 0.000000e+00 : f32
    %37 = vector.broadcast %cst_12 : f32 to vector<8x32xf32>
    %38 = arith.select %36, %11, %37 : vector<8x32xi1>, vector<8x32xf32>
    %cst_13 = arith.constant dense<0.000000e+00> : vector<8xf32>
    %39 = vector.multi_reduction <add>, %38, %cst_13 [1] : vector<8x32xf32> to vector<8xf32>
    %40 = vector.shape_cast %39 : vector<8xf32> to vector<8x1xf32>
    %cst_14 = arith.constant 2.000000e+00 : f32
    %41 = vector.broadcast %cst_14 : f32 to vector<8x32xf32>
    %42 = arith.mulf %41, %11 : vector<8x32xf32>
    %43 = math.exp %42 : vector<8x32xf32>
    %cst_15 = arith.constant dense<0.000000e+00> : vector<8xf32>
    %44 = vector.multi_reduction <add>, %43, %cst_15 [1] : vector<8x32xf32> to vector<8xf32>
    %45 = vector.shape_cast %44 : vector<8xf32> to vector<8x1xf32>
    %46 = math.log %45 : vector<8x1xf32>
    %cst_16 = arith.constant 2.000000e+00 : f32
    %47 = vector.broadcast %cst_16 : f32 to vector<8x1xf32>
    %48 = arith.mulf %47, %40 : vector<8x1xf32>
    %49 = arith.subf %46, %48 : vector<8x1xf32>
    %cst_17 = arith.constant 2.000000e+00 : f32
    %50 = vector.broadcast %cst_17 : f32 to vector<8x1xf32>
    %51 = arith.mulf %50, %33 : vector<8x1xf32>
    %cst_18 = arith.constant 5.000000e-01 : f32
    %52 = vector.broadcast %cst_18 : f32 to vector<8x1xf32>
    %53 = arith.mulf %52, %49 : vector<8x1xf32>
    %54 = arith.addf %51, %53 : vector<8x1xf32>
    %c0_19 = arith.constant 0 : index
    %c0_20 = arith.constant 0 : index
    %55 = vector.load %arg6[%c0_19, %c0_20] : memref<8x1xf32, #tpu.memory_space<vmem>>, vector<8x1xf32>
    %56 = arith.addf %55, %54 : vector<8x1xf32>
    %c0_21 = arith.constant 0 : index
    %c0_22 = arith.constant 0 : index
    %57 = vector.load %arg6[%c0_21, %c0_22] : memref<8x1xf32, #tpu.memory_space<vmem>>, vector<8x1xf32>
    tpu.vector_store %arg6[%c0_21, %c0_22], %56 {strides = array<i32>} : memref<8x1xf32, #tpu.memory_space<vmem>>, vector<8x1xf32>,
    %c0_i32_23 = arith.constant 0 : i32
    %58 = arith.cmpi eq, %arg1, %c0_i32_23 : i32
    %59 = arith.extui %58 : i1 to i32
    %c0_i32_24 = arith.constant 0 : i32
    %60 = arith.cmpi ne, %59, %c0_i32_24 : i32
    scf.if %60 {
      %c0_25 = arith.constant 0 : index
      %c0_26 = arith.constant 0 : index
      %61 = vector.load %arg6[%c0_25, %c0_26] : memref<8x1xf32, #tpu.memory_space<vmem>>, vector<8x1xf32>
      %62 = vector.shape_cast %61 : vector<8x1xf32> to vector<1x8x1xf32>
      %cst_27 = arith.constant dense<0.000000e+00> : vector<1xf32>
      %63 = vector.multi_reduction <add>, %62, %cst_27 [1, 2] : vector<1x8x1xf32> to vector<1xf32>
      %64 = vector.shape_cast %63 : vector<1xf32> to vector<1x1x1xf32>
      %65 = vector.extract %64[0, 0, 0] : f32 from vector<1x1x1xf32>
      %cst_28 = arith.constant 1.250000e-01 : f32
      %66 = arith.mulf %65, %cst_28 : f32
      %c0_29 = arith.constant 0 : index
      %c0_30 = arith.constant 0 : index
      %67 = memref.load %arg5[%c0_29, %c0_30] : memref<1x1xf32, #tpu.memory_space<smem>>
      memref.store %66, %arg5[%c0_29, %c0_30] : memref<1x1xf32, #tpu.memory_space<smem>>
    } else {
    }
    return
  }
  func.func @transform_0(%arg0: i32, %arg1: i32) -> (i32, i32) {
    %c1_i32 = arith.constant 1 : i32
    %0 = arith.muli %arg0, %c1_i32 : i32
    %1 = arith.addi %0, %arg1 : i32
    %c0_i32 = arith.constant 0 : i32
    %c0_i32_0 = arith.constant 0 : i32
    return %1, %c0_i32 : i32, i32
  }
  func.func @transform_1(%arg0: i32, %arg1: i32) -> (i32, i32) {
    %c1_i32 = arith.constant 1 : i32
    %0 = arith.muli %arg0, %c1_i32 : i32
    %1 = arith.addi %0, %arg1 : i32
    %c0_i32 = arith.constant 0 : i32
    %c0_i32_0 = arith.constant 0 : i32
    return %1, %c0_i32 : i32, i32
  }
  func.func @transform_2(%arg0: i32, %arg1: i32) -> (i32, i32) {
    %c1_i32 = arith.constant 1 : i32
    %0 = arith.muli %arg0, %c1_i32 : i32
    %1 = arith.addi %0, %arg1 : i32
    %c0_i32 = arith.constant 0 : i32
    %c0_i32_0 = arith.constant 0 : i32
    return %1, %c0_i32 : i32, i32
  }
  func.func @transform_3(%arg0: i32, %arg1: i32) -> (i32, i32) {
    %c0_i32 = arith.constant 0 : i32
    %c0_i32_0 = arith.constant 0 : i32
    return %arg0, %c0_i32 : i32, i32
  }
}

</mosaic_0001>

<bundles_post_ra>
// kernel: tpu_custom_call.1
= control target key start
LH: loop header
LB: loop body
LE: loop exit
PB: predicated region body
PF: predicated region fallthrough
CT: control target
= control target key end

     0   :  { %8 = vsyncpa [#allocation4], 0  ;;  %s303_s0 = inlined_call_operand.vmem [shape: f32[8,32], index: 0, kind: input, shape index: {}]   ;;  %s304_s1 = inlined_call_operand.hbm [shape: f32[8,32], index: 1, kind: input, shape index: {}]   ;;  %s305_s2 = inlined_call_operand.vmem [shape: s32[8,1], index: 2, kind: input, shape index: {}]   ;;  %s306_s3 = inlined_call_operand.hbm [shape: f32[1,1], index: 3, kind: output, shape index: {}]  }
   0x1   :  { %9 = vsyncpa [#allocation5], 0  ;;  %s26_s14 = sshll.u32 %s304_s1, 4  ;;  %s257_s15 = smov [#allocation3]   ;;  %s27_s14 = int_to_ptr.hbm [resolvable:$true] %s26_s14 }
   0x2   :  { %s28_s16 = sshll.u32 %s257_s15, 4  ;;  %s29_s16 = int_to_ptr.vmem [resolvable:$true] %s28_s16 }
   0x3   :  { %31 = dma.hbm_to_vmem [thread:$0]  %s27_s14, 128, %s29_s16, [#allocation4]  }
   0x4   :  { %253 = dma.done.wait [#allocation4], 128  }
   0x5   :  { %254 = vsyncadd [#allocation4], 4294967168  ;;  %v258_v0 = vmov 0   ;;  %v74_v1 = vld [vmem:[#allocation3] sm:$0xff]  ;;  %vm77_vm0 = vcmask 261120   ;;  %v75_v2 = vld [vmem:[%s305_s2] sm:$0xff]  ;;  %v123_v23 = vlaneseq }
   0x6   :  { %201 = vset.pattern.permute.xlu1 %v258_v0  ;;  %202 = vset.pattern.permute.xlu0 %v258_v0  ;;  %v89_v3 = vmul.f32 0.5, %v74_v1  ;;  %v73_v4 = vld [vmem:[%s303_s0] sm:$0xff]  ;;  %vm71_vm2 = vcmask 7168   ;;  %v259_v30 = vmov 0.0   ;;  %s172_s20 = sshll.u32 %s306_s3, 4  ;;  %s260_s23 = smov [#allocation6]   ;;  %s173_s20 = int_to_ptr.hbm [resolvable:$true] %s172_s20 }
   0x7   :  { %126 = vperm.xlu1 %201, %v75_v2   ;;  %v76_v6 = vmul.f32 0.5, %v73_v4  ;;  %v124_v25 = vand.u32 127, %v123_v23  ;;  %72 = vst.msk [vmem:[#allocation2] sm:$0xff] %vm71_vm2, %v259_v30 }
   0x8   :  { %v90_v5 = vsel %vm77_vm0, %v89_v3, -inf }
   0x9   :  { %91 = vmax.xlane.f32.xlu0 %v90_v5  ;;  %v78_v7 = vsel %vm77_vm0, %v76_v6, -inf }
   0xe   :  { %v146_v59 = vld [vmem:[#allocation2] sm:$0xff] }
  0x11   :  { %79 = vmax.xlane.f32.xlu0 %v78_v7 }
  0x79   :  { %v127_v26 = vpop.permute.xlu1 %126 }
  0x7a   :  { %vm128_vm1 = vcmp.eq.s32.totalorder %v124_v25, %v127_v26 }
  0x7c   :  { %v92_v8 = vpop.xlane.xlu0 %91 }
  0x7d   :  { %v93_v9 = vsub.f32 %v89_v3, %v92_v8 }
  0x7f   :  { %v94_v10 = vmul.f32 1.442695, %v93_v9 }
  0x81   :  { %203 = vpow2.f32 %v94_v10 }
  0x84   :  { %v80_v11 = vpop.xlane.xlu0 %79 }
  0x85   :  { %v81_v12 = vsub.f32 %v76_v6, %v80_v11 }
  0x87   :  { %v204_v13 = vpop.eup %203  ;;  %v113_v14 = vsub.f32 %v93_v9, %v81_v12  ;;  %v82_v15 = vmul.f32 1.442695, %v81_v12  ;;  %v133_v16 = vmul.f32 2.0, %v81_v12  ;;  %v129_v28 = vsel %vm128_vm1, %v81_v12, 0.0 }
  0x88   :  { %v96_v17 = vsel %vm77_vm0, %v204_v13, 0.0  ;;  %v130_v29 = vsel %vm77_vm0, %v129_v28, 0.0 }
  0x89   :  { %97 = vadd.xlane.f32.xlu1 %v96_v17  ;;  %v114_v18 = vmul.f32 %v204_v13, %v113_v14  ;;  %205 = vpow2.f32 %v82_v15  ;;  %v134_v20 = vmul.f32 1.442695, %v133_v16 }
  0x8b   :  { %v115_v19 = vsel %vm77_vm0, %v114_v18, 0.0  ;;  %207 = vpow2.f32 %v134_v20 }
  0x8c   :  { %116 = vadd.xlane.f32.xlu0 %v115_v19 }
  0x8f   :  { %v206_v21 = vpop.eup %205 }
  0x90   :  { %v84_v22 = vsel %vm77_vm0, %v206_v21, 0.0 }
  0x91   :  { %85 = vadd.xlane.f32.xlu2 %v84_v22  ;;  %v208_v24 = vpop.eup %207 }
  0x92   :  { %v136_v27 = vsel %vm77_vm0, %v208_v24, 0.0 }
  0x99   :  { %137 = vadd.xlane.f32.xlu2 %v136_v27 }
  0xa1   :  { %131 = vadd.xlane.f32.xlu2 %v130_v29 }
  0xfc   :  { %v98_v31 = vpop.xlane.xlu1 %97 }
  0xfd   :  { %209 = vrcp.f32 %v98_v31  ;;  %v110_v36 = vand.u32 2147483648, %v98_v31  ;;  %v108_v38 = vand.u32 2147483647, %v98_v31  ;;  %vm104_vm4 = vweird.f32 %v98_v31 }
  0xfe   :  { %211 = vlog2.f32 %v98_v31 }
  0xff   :  { %v111_v40 = vor.u32 1.1754944e-38, %v110_v36  ;;  %vm109_vm6 = vcmp.eq.f32.partialorder %v108_v38, 8.507059e+37  ;;  %v117_v45 = vpop.xlane.xlu0 %116 }
 0x103   :  { %v210_v32 = vpop.eup %209 }
 0x104   :  { %v100_v33 = vmul.f32 %v210_v32, %v98_v31  ;;  %v86_v34 = vpop.xlane.xlu2 %85  ;;  %vm105_vm3 = vweird.f32 %v210_v32  ;;  %v212_v41 = vpop.eup %211 }
 0x105   :  { %213 = vlog2.f32 %v86_v34  ;;  %vm106_vm5 = vmor %vm104_vm4, %vm105_vm3  ;;  %v120_v47 = vmul.f32 0.6931472, %v212_v41 }
 0x106   :  { %v101_v35 = vsub.f32 1.0, %v100_v33 }
 0x108   :  { %v102_v37 = vmul.f32 %v210_v32, %v101_v35 }
 0x10a   :  { %v103_v39 = vadd.f32 %v210_v32, %v102_v37 }
 0x10b   :  { %v214_v48 = vpop.eup %213 }
 0x10c   :  { %v107_v42 = vsel %vm106_vm5, %v210_v32, %v103_v39  ;;  %v138_v43 = vpop.xlane.xlu2 %137  ;;  %v88_v51 = vmul.f32 0.6931472, %v214_v48 }
 0x10d   :  { %v112_v44 = vsel %vm109_vm6, %v111_v40, %v107_v42  ;;  %215 = vlog2.f32 %v138_v43 }
 0x10e   :  { %v118_v46 = vmul.f32 %v117_v45, %v112_v44 }
 0x110   :  { %v121_v49 = vsub.f32 %v118_v46, %v120_v47 }
 0x112   :  { %v122_v54 = vadd.f32 %v121_v49, %v88_v51 }
 0x113   :  { %v216_v50 = vpop.eup %215 }
 0x114   :  { %v140_v52 = vmul.f32 0.6931472, %v216_v50  ;;  %v132_v53 = vpop.xlane.xlu2 %131  ;;  %v143_v57 = vmul.f32 2.0, %v122_v54 }
 0x115   :  { %v141_v55 = vmul.f32 2.0, %v132_v53 }
 0x117   :  { %v142_v56 = vsub.f32 %v140_v52, %v141_v55 }
 0x119   :  { %v144_v58 = vmul.f32 0.5, %v142_v56 }
 0x11b   :  { %v145_v60 = vadd.f32 %v144_v58, %v143_v57 }
 0x11d   :  { %v147_v61 = vadd.f32 %v146_v59, %v145_v60 }
 0x11f   :  { %149 = vst.msk [vmem:[#allocation2] sm:$0xff] %vm71_vm2, %v147_v61 }
 0x126   :  { %v153_v62 = vld [vmem:[#allocation2] sm:$0xff] }
 0x127   :  { %v154_v63 = vsel %vm71_vm2, %v153_v62, 0.0 }
 0x128   :  { %155 = vadd.xlane.f32.xlu0 %v154_v63 }
 0x19b   :  { %v156_v0 = vpop.xlane.xlu0 %155 }
 0x19c   :  { %v157_v1 = vrot.slane %v156_v0, 4 }
 0x19e   :  { %v158_v2 = vadd.f32 %v157_v1, %v156_v0 }
 0x1a0   :  { %v159_v3 = vrot.slane %v158_v2, 2 }
 0x1a2   :  { %v160_v4 = vadd.f32 %v159_v3, %v158_v2 }
 0x1a4   :  { %v161_v5 = vrot.slane %v160_v4, 1 }
 0x1a6   :  { %v162_v6 = vadd.f32 %v161_v5, %v160_v4 }
 0x1a8   :  { %195 = vpush %v162_v6 }
 0x1d9   :  { %s196_s21 = spop %195 }
 0x1da   :  { %s164_s22 = smul.f32 0.125, %s196_s21 }
 0x1dc   :  { %166 = sst [smem:[#allocation6]] %s164_s22 }
 0x1dd   :  { %175 = dma.smem_to_hbm %s260_s23, 16, %s173_s20, [#allocation5]  }
 0x1de   :  { %255 = dma.done.wait [#allocation5], 16  }
 0x1df   :  { %256 = vsyncadd [#allocation5], 4294967280 }
 0x1e0   :  { %180 = sfence }
 0x1e1   :  { %181 = vsyncpa [#allocation4], 1 }
 0x1e2   :  { %182 = vsyncpa [#allocation5], 1 }

</bundles_post_ra>
